<compile_context>
chip_gen: v7x
topology: tpu7x:2x2x1
jax: 0.10.0
libtpu: 0.0.40
codegen_flags: <defaults>
</compile_context>

<pallas_src>
import numpy as np
import jax
import jax.numpy as jnp
from jax.experimental import pallas as pl
from jax.experimental.pallas import tpu as pltpu


def _round_up(x, m):
    return (x + m - 1) // m * m


# ------------------------- Pallas kernels -------------------------

def _mm_bias_kernel(a_ref, w_ref, b_ref, o_ref):
    y = jnp.dot(a_ref[...], w_ref[...], preferred_element_type=jnp.float32)
    o_ref[...] = (y + b_ref[...]).astype(o_ref.dtype)


def _mm_stats_kernel(a_ref, w_ref, o_ref, sum_ref, sq_ref):
    # No bias: these convs feed train-mode BatchNorm, which cancels a
    # per-channel bias exactly.  Padded (zero) rows of A contribute 0 to the
    # column sums, so the stats are exact over the true M rows.
    y = jnp.dot(a_ref[...], w_ref[...], preferred_element_type=jnp.float32)
    o_ref[...] = y.astype(o_ref.dtype)
    sum_ref[...] = jnp.sum(y, axis=0, keepdims=True)
    sq_ref[...] = jnp.sum(y * y, axis=0, keepdims=True)


def _scale_shift_relu_kernel(x_ref, s_ref, t_ref, o_ref):
    x = x_ref[...].astype(jnp.float32)
    o_ref[...] = jnp.maximum(x * s_ref[...] + t_ref[...], 0.0).astype(o_ref.dtype)


# ------------------------- kernel wrappers -------------------------

def _pick_tn(n_padded):
    # 256-wide N tiles for the 256-wide MXU on v6e/v7x; 128 when N is one tile.
    return 256 if (n_padded % 256 == 0) else 128


def _prep_a(a, k_padded):
    """Cast activations to bf16 and pad rows to 8 / K to the packed K."""
    M, K = a.shape
    Mp = _round_up(M, 8)
    a = a.astype(jnp.bfloat16)
    if Mp != M or k_padded != K:
        a = jnp.pad(a, ((0, Mp - M), (0, k_padded - K)))
    return a, Mp


def matmul_bias_packed(a, packed, out_dtype=jnp.bfloat16):
    """out = a @ W + b with pre-packed (K, Np) bf16 weights."""
    wm, bias, N = packed['w'], packed['b'], packed['n']
    Kp, Np = wm.shape
    a_p, Mp = _prep_a(a, Kp)
    tn = _pick_tn(Np)
    out = pl.pallas_call(
        _mm_bias_kernel,
        out_shape=jax.ShapeDtypeStruct((Mp, Np), out_dtype),
        grid_spec=pltpu.PrefetchScalarGridSpec(
            num_scalar_prefetch=0,
            grid=(Np // tn,),
            in_specs=[pl.BlockSpec((Mp, Kp), lambda j: (0, 0)),
                      pl.BlockSpec((Kp, tn), lambda j: (0, j)),
                      pl.BlockSpec((1, tn), lambda j: (0, j))],
            out_specs=pl.BlockSpec((Mp, tn), lambda j: (0, j))),
        compiler_params=pltpu.CompilerParams(
            dimension_semantics=("parallel",)),
    )(a_p, wm, bias)
    return out[:a.shape[0], :N]


def matmul_stats_packed(a, packed):
    """(a @ W, per-column sum, per-column sum-of-squares), no bias."""
    wm, N = packed['w'], packed['n']
    Kp, Np = wm.shape
    a_p, Mp = _prep_a(a, Kp)
    tn = _pick_tn(Np)
    y, cs, csq = pl.pallas_call(
        _mm_stats_kernel,
        out_shape=(jax.ShapeDtypeStruct((Mp, Np), jnp.bfloat16),
                   jax.ShapeDtypeStruct((1, Np), jnp.float32),
                   jax.ShapeDtypeStruct((1, Np), jnp.float32)),
        grid_spec=pltpu.PrefetchScalarGridSpec(
            num_scalar_prefetch=0,
            grid=(Np // tn,),
            in_specs=[pl.BlockSpec((Mp, Kp), lambda j: (0, 0)),
                      pl.BlockSpec((Kp, tn), lambda j: (0, j))],
            out_specs=(pl.BlockSpec((Mp, tn), lambda j: (0, j)),
                       pl.BlockSpec((1, tn), lambda j: (0, j)),
                       pl.BlockSpec((1, tn), lambda j: (0, j)))),
        compiler_params=pltpu.CompilerParams(
            dimension_semantics=("parallel",)),
    )(a_p, wm)
    M = a.shape[0]
    return y[:M, :N], cs[0, :N], csq[0, :N]


def scale_shift_relu(x2d, scale, shift, out_dtype=jnp.bfloat16):
    """y = relu(x * scale + shift), whole slab in one block (largest ~128 KiB)."""
    M, C = x2d.shape
    Mp, Cp = _round_up(M, 8), _round_up(C, 128)
    x_p = x2d
    if Mp != M or Cp != C:
        x_p = jnp.pad(x_p, ((0, Mp - M), (0, Cp - C)))
    s_p = jnp.pad(scale.astype(jnp.float32).reshape(1, C), ((0, 0), (0, Cp - C)))
    t_p = jnp.pad(shift.astype(jnp.float32).reshape(1, C), ((0, 0), (0, Cp - C)))
    out = pl.pallas_call(
        _scale_shift_relu_kernel,
        out_shape=jax.ShapeDtypeStruct((Mp, Cp), out_dtype),
        grid_spec=pltpu.PrefetchScalarGridSpec(
            num_scalar_prefetch=0,
            grid=(1,),
            in_specs=[pl.BlockSpec((Mp, Cp), lambda i: (0, 0)),
                      pl.BlockSpec((1, Cp), lambda i: (0, 0)),
                      pl.BlockSpec((1, Cp), lambda i: (0, 0))],
            out_specs=pl.BlockSpec((Mp, Cp), lambda i: (0, 0))),
        compiler_params=pltpu.CompilerParams(
            dimension_semantics=("arbitrary",)),
    )(x_p, s_p, t_p)
    return out[:M, :C]


# ------------------------- weight packing (done once at init) -------------------------

def _pack_matmul(wm, bias):
    """wm:(K,N) f32 -> padded (Kp,Np) bf16, bias -> (1,Np) f32."""
    K, N = wm.shape
    Kp, Np = _round_up(K, 16), _round_up(N, 128)
    w_p = jnp.pad(wm, ((0, Kp - K), (0, Np - N))).astype(jnp.bfloat16)
    b_p = None
    if bias is not None:
        b_p = jnp.pad(bias.astype(jnp.float32).reshape(1, N), ((0, 0), (0, Np - N)))
    return dict(w=w_p, b=b_p, n=N)


def pack_conv3x3(w):
    # torch layout (Cout, Cin, 3, 3) -> (9*Cin, Cout), tap order (ky, kx, ci).
    cout, cin = w.shape[0], w.shape[1]
    wm = jnp.transpose(w, (2, 3, 1, 0)).reshape(9 * cin, cout)
    return _pack_matmul(wm, None)          # bias dropped: cancelled by BatchNorm


def pack_conv1x1(w, b):
    cout, cin = w.shape[0], w.shape[1]
    return _pack_matmul(w.reshape(cout, cin).T, b)


def pack_conv_transpose2x2(w, b):
    # torch ConvTranspose2d layout (Cin, Cout, 2, 2) -> (Cin, 4*Cout), (ky,kx,co).
    cin, cout = w.shape[0], w.shape[1]
    wm = jnp.transpose(w, (0, 2, 3, 1)).reshape(cin, 4 * cout)
    return _pack_matmul(wm, jnp.tile(b, 4))


# ------------------------- NN building blocks (NHWC, bf16 activations) -------------------------

def bn_relu_from_stats(y2d, colsum, colsq, count, gamma, beta, eps=1e-5):
    # Train-mode BatchNorm (biased batch statistics), stats from the fused matmul.
    mean = colsum / count
    var = jnp.maximum(colsq / count - mean * mean, 0.0)
    scale = gamma / jnp.sqrt(var + eps)
    shift = beta - mean * scale
    return scale_shift_relu(y2d, scale, shift)


def conv3x3_bn_relu(x, packed, gamma, beta):
    """3x3 same conv (im2col + MXU matmul with fused BN stats) + BN + ReLU."""
    N, H, W, C = x.shape
    cout = packed['n']
    # TODO(synk): im2col patches are still materialized in HBM (bf16); a
    #             9-tap grid axis with shifted-window index_maps would avoid it.
    xp = jnp.pad(x, ((0, 0), (1, 1), (1, 1), (0, 0)))
    patches = jnp.concatenate(
        [xp[:, ky:ky + H, kx:kx + W, :] for ky in range(3) for kx in range(3)],
        axis=-1)                                   # (N,H,W,9*Cin), order (ky,kx,ci)
    a = patches.reshape(N * H * W, 9 * C)
    y, cs, csq = matmul_stats_packed(a, packed)
    y = bn_relu_from_stats(y, cs, csq, float(N * H * W), gamma, beta)
    return y.reshape(N, H, W, cout)


def conv1x1(x, packed, out_dtype=jnp.float32):
    N, H, W, C = x.shape
    y = matmul_bias_packed(x.reshape(N * H * W, C), packed, out_dtype=out_dtype)
    return y.reshape(N, H, W, packed['n'])


def conv_transpose2x2(x, packed):
    N, H, W, Cin = x.shape
    n4 = packed['n']
    cout = n4 // 4
    a = x.reshape(N * H * W, Cin)
    y = matmul_bias_packed(a, packed, out_dtype=jnp.bfloat16)   # (M, 4*Cout)
    y = y.reshape(N, H, W, 2, 2, cout)
    y = jnp.transpose(y, (0, 1, 3, 2, 4, 5)).reshape(N, 2 * H, 2 * W, cout)
    return y


def maxpool2(x):
    N, H, W, C = x.shape
    return jnp.max(x.reshape(N, H // 2, 2, W // 2, 2, C), axis=(2, 4))


def double_conv_fwd(p, x):
    x = conv3x3_bn_relu(x, p['c1'], p['g1'], p['be1'])
    x = conv3x3_bn_relu(x, p['c2'], p['g2'], p['be2'])
    return x


def down_fwd(p, x):
    return double_conv_fwd(p, maxpool2(x))


def up_fwd(p, x1, x2):
    x1 = conv_transpose2x2(x1, p['ct'])
    # Replicate PyTorch's F.pad argument ordering (last dim = W first).
    diff_x = x2.shape[1] - x1.shape[1]   # torch size(2) (H difference)
    diff_y = x2.shape[2] - x1.shape[2]   # torch size(3) (W difference)
    x1 = jnp.pad(x1, ((0, 0),
                      (diff_y // 2, diff_y - diff_y // 2),   # H padded by diff_y
                      (diff_x // 2, diff_x - diff_x // 2),   # W padded by diff_x
                      (0, 0)))
    x = jnp.concatenate([x2, x1], axis=-1)   # torch.cat(dim=1) == channel axis
    return double_conv_fwd(p['conv'], x)


def unet_fwd(params, x):
    x1 = double_conv_fwd(params['inc'], x)
    x2 = down_fwd(params['down1'], x1)
    x3 = down_fwd(params['down2'], x2)
    x4 = down_fwd(params['down3'], x3)
    x5 = down_fwd(params['down4'], x4)
    x = up_fwd(params['up1'], x5, x4)
    x = up_fwd(params['up2'], x, x3)
    x = up_fwd(params['up3'], x, x2)
    x = up_fwd(params['up4'], x, x1)
    x = conv1x1(x, params['outc'], out_dtype=jnp.float32)
    return x


# ------------------------- parameter init (deterministic, pre-packed) -------------------------

def _conv_w(key, cout, cin, k):
    return jax.random.normal(key, (cout, cin, k, k), jnp.float32) * float(1.0 / np.sqrt(cin * k * k))


def _double_conv_params(key, cin, cout):
    k1, k2 = jax.random.split(key)
    return dict(
        c1=pack_conv3x3(_conv_w(k1, cout, cin, 3)),
        g1=jnp.ones((cout,), jnp.float32), be1=jnp.zeros((cout,), jnp.float32),
        c2=pack_conv3x3(_conv_w(k2, cout, cout, 3)),
        g2=jnp.ones((cout,), jnp.float32), be2=jnp.zeros((cout,), jnp.float32))


def _up_params(key, cin, cout):
    k1, k2 = jax.random.split(key)
    wt = jax.random.normal(k1, (cin, cin // 2, 2, 2), jnp.float32) * float(1.0 / np.sqrt(cin * 4))
    bt = jnp.zeros((cin // 2,), jnp.float32)
    return dict(ct=pack_conv_transpose2x2(wt, bt),
                conv=_double_conv_params(k2, cin, cout))


def init_unet_params(key):
    ks = jax.random.split(key, 10)
    params = dict(
        inc=_double_conv_params(ks[0], 1, 64),
        down1=_double_conv_params(ks[1], 64, 128),
        down2=_double_conv_params(ks[2], 128, 256),
        down3=_double_conv_params(ks[3], 256, 512),
        down4=_double_conv_params(ks[4], 512, 1024),
        up1=_up_params(ks[5], 1024, 512),
        up2=_up_params(ks[6], 512, 256),
        up3=_up_params(ks[7], 256, 128),
        up4=_up_params(ks[8], 128, 64),
    )
    wo = _conv_w(ks[9], 1, 64, 1)
    params['outc'] = pack_conv1x1(wo, jnp.zeros((1,), jnp.float32))
    return params


# ------------------------- DDPM -------------------------

def piecewise_linear_noise_schedule(num_timesteps, segments):
    assert segments[0][0] == 0, 'First segment should start at t=0'
    sched = np.zeros(num_timesteps, dtype=np.float32)
    prev_end_t = 0
    prev_noise_level = 1.0
    for end_t, slope in segments:
        duration = end_t - prev_end_t
        if duration > 0:
            levels = np.linspace(prev_noise_level,
                                 prev_noise_level - duration * slope,
                                 duration).astype(np.float32)
            sched[prev_end_t:end_t] = levels
            prev_noise_level = float(levels[-1])
        prev_end_t = end_t
    return jnp.asarray(sched)


def ddpm_forward(params, schedule, x_nchw, t, noise_key):
    noise_std = schedule[t]
    # TODO(synk): torch.randn_like's RNG stream cannot be bit-matched; a
    #             deterministic JAX normal draw is used instead.
    noise = jax.random.normal(noise_key, x_nchw.shape, x_nchw.dtype) * noise_std
    x = x_nchw + noise
    x = jnp.transpose(x, (0, 2, 3, 1)).astype(jnp.bfloat16)   # NCHW -> NHWC, bf16
    y = unet_fwd(params, x)
    return jnp.transpose(y, (0, 3, 1, 2)).astype(jnp.float32)  # NHWC -> NCHW


if __name__ == "__main__":
    num_timesteps = 100
    segments = [(0, 0.0), (50, 0.01), (100, 0.005)]
    t = 25

    key = jax.random.PRNGKey(0)
    xkey, nkey, pkey = jax.random.split(key, 3)

    x = jax.random.normal(xkey, (2, 1, 16, 16), jnp.float32)   # NCHW, 1 input channel
    params = init_unet_params(pkey)
    schedule = piecewise_linear_noise_schedule(num_timesteps, segments)

    out = ddpm_forward(params, schedule, x, t, nkey)
    out = jax.block_until_ready(out)

    assert out.shape == (2, 1, 16, 16), out.shape
    assert out.dtype == jnp.float32
    assert bool(jnp.all(jnp.isfinite(out)))
    print("KERNEL_OK")
</pallas_src>

<mosaic_0001>
module attributes {stable_mosaic.version = 11 : i64} {
  func.func @_mm_stats_kernel(%arg0: i32, %arg1: memref<512x16xbf16, #tpu.memory_space<vmem>>, %arg2: memref<16x128xbf16, #tpu.memory_space<vmem>>, %arg3: memref<512x128xbf16, #tpu.memory_space<vmem>>, %arg4: memref<1x128xf32, #tpu.memory_space<vmem>>, %arg5: memref<1x128xf32, #tpu.memory_space<vmem>>) attributes {dimension_semantics = [#tpu.dimension_semantics<parallel>], iteration_bounds = array<i64: 1>, scalar_prefetch = 0 : i64, scratch_operands = 0 : i64, tpu.core_type = #tpu.core_type<tc>, window_params = [{pipeline_mode = #tpu.pipeline_mode<synchronous>, transform_indices = @transform_0, window_bounds = array<i64: 512, 16>}, {transform_indices = @transform_1, window_bounds = array<i64: 16, 128>}, {transform_indices = @transform_2, window_bounds = array<i64: 512, 128>}, {transform_indices = @transform_3, window_bounds = array<i64: 1, 128>}, {transform_indices = @transform_4, window_bounds = array<i64: 1, 128>}]} {
    %c0 = arith.constant 0 : index
    %c0_0 = arith.constant 0 : index
    %0 = vector.load %arg1[%c0, %c0_0] : memref<512x16xbf16, #tpu.memory_space<vmem>>, vector<512x16xbf16>
    %c0_1 = arith.constant 0 : index
    %c0_2 = arith.constant 0 : index
    %1 = vector.load %arg2[%c0_1, %c0_2] : memref<16x128xbf16, #tpu.memory_space<vmem>>, vector<16x128xbf16>
    %cst = arith.constant dense<0.000000e+00> : vector<512x128xf32>
    %2 = tpu.matmul %0, %1, %cst {dimension_numbers = #tpu.dot_dimension_numbers<[1], [0], [0], [1], [0, 0, 1, 1], [], []>} : vector<512x16xbf16>, vector<16x128xbf16>, vector<512x128xf32> -> vector<512x128xf32>
    %3 = arith.truncf %2 : vector<512x128xf32> to vector<512x128xbf16>
    %c0_3 = arith.constant 0 : index
    %c0_4 = arith.constant 0 : index
    %4 = vector.load %arg3[%c0_3, %c0_4] : memref<512x128xbf16, #tpu.memory_space<vmem>>, vector<512x128xbf16>
    tpu.vector_store %arg3[%c0_3, %c0_4], %3 {strides = array<i32>} : memref<512x128xbf16, #tpu.memory_space<vmem>>, vector<512x128xbf16>,
    %cst_5 = arith.constant dense<0.000000e+00> : vector<128xf32>
    %5 = vector.multi_reduction <add>, %2, %cst_5 [0] : vector<512x128xf32> to vector<128xf32>
    %6 = vector.shape_cast %5 : vector<128xf32> to vector<1x128xf32>
    %c0_6 = arith.constant 0 : index
    %c0_7 = arith.constant 0 : index
    %7 = vector.load %arg4[%c0_6, %c0_7] : memref<1x128xf32, #tpu.memory_space<vmem>>, vector<1x128xf32>
    tpu.vector_store %arg4[%c0_6, %c0_7], %6 {strides = array<i32>} : memref<1x128xf32, #tpu.memory_space<vmem>>, vector<1x128xf32>,
    %8 = arith.mulf %2, %2 : vector<512x128xf32>
    %cst_8 = arith.constant dense<0.000000e+00> : vector<128xf32>
    %9 = vector.multi_reduction <add>, %8, %cst_8 [0] : vector<512x128xf32> to vector<128xf32>
    %10 = vector.shape_cast %9 : vector<128xf32> to vector<1x128xf32>
    %c0_9 = arith.constant 0 : index
    %c0_10 = arith.constant 0 : index
    %11 = vector.load %arg5[%c0_9, %c0_10] : memref<1x128xf32, #tpu.memory_space<vmem>>, vector<1x128xf32>
    tpu.vector_store %arg5[%c0_9, %c0_10], %10 {strides = array<i32>} : memref<1x128xf32, #tpu.memory_space<vmem>>, vector<1x128xf32>,
    return
  }
  func.func @transform_0(%arg0: i32) -> (i32, i32) {
    %c0_i32 = arith.constant 0 : i32
    %c0_i32_0 = arith.constant 0 : i32
    %c0_i32_1 = arith.constant 0 : i32
    return %c0_i32, %c0_i32_0 : i32, i32
  }
  func.func @transform_1(%arg0: i32) -> (i32, i32) {
    %c0_i32 = arith.constant 0 : i32
    %c0_i32_0 = arith.constant 0 : i32
    return %c0_i32, %arg0 : i32, i32
  }
  func.func @transform_2(%arg0: i32) -> (i32, i32) {
    %c0_i32 = arith.constant 0 : i32
    %c0_i32_0 = arith.constant 0 : i32
    return %c0_i32, %arg0 : i32, i32
  }
  func.func @transform_3(%arg0: i32) -> (i32, i32) {
    %c0_i32 = arith.constant 0 : i32
    %c0_i32_0 = arith.constant 0 : i32
    return %c0_i32, %arg0 : i32, i32
  }
  func.func @transform_4(%arg0: i32) -> (i32, i32) {
    %c0_i32 = arith.constant 0 : i32
    %c0_i32_0 = arith.constant 0 : i32
    return %c0_i32, %arg0 : i32, i32
  }
}

</mosaic_0001>

<bundles_post_ra>
// kernel: tpu_custom_call.1
= control target key start
LH: loop header
LB: loop body
LE: loop exit
PB: predicated region body
PF: predicated region fallthrough
CT: control target
= control target key end

     0   :  { %10 = vsyncpa [#allocation3], 0  ;;  %vm249_vm0 = vcmask 130048   ;;  %s2192_s0 = inlined_call_operand.vmem [shape: bf16[512,16], index: 0, kind: input, shape index: {}]   ;;  %s2193_s1 = inlined_call_operand.vmem [shape: bf16[16,128], index: 1, kind: input, shape index: {}]   ;;  %s2194_s2 = inlined_call_operand.hbm [shape: bf16[512,128], index: 2, kind: output, shape index: {0}]   ;;  %s2195_s3 = inlined_call_operand.hbm [shape: f32[1,128], index: 3, kind: output, shape index: {1}]   ;;  %s2196_s4 = inlined_call_operand.hbm [shape: f32[1,128], index: 4, kind: output, shape index: {2}]  }
   0x1   :  { %v1692_v0 = vld [vmem:[%s2193_s1] sm:$0xff]   ;;  %v1694_v2 = vld [vmem:[%s2192_s0 + $0x8] sm:$0xff]   ;;  %v1695_v3 = vld [vmem:[%s2192_s0 + $0x10] sm:$0xff]  }
   0x2   :  { %v1693_v1 = vld [vmem:[%s2192_s0] sm:$0xff]   ;;  %1619 = vmatprep.subr.bf16.mxu0 %v1692_v0  ;;  %1685 = vmatprep.subr.bf16.mxu1 %v1692_v0  ;;  %v1696_v4 = vld [vmem:[%s2192_s0 + $0x18] sm:$0xff]   ;;  %v1698_v6 = vld [vmem:[%s2192_s0 + $0x28] sm:$0xff]  }
   0x3   :  { %1620 = vmatpush3.bf16.msra.mxu0 %v1692_v0  ;;  %1621 = vmatprep.mubr.msk.bf16.mxu0 %vm249_vm0, %v1693_v1  ;;  %v1697_v5 = vld [vmem:[%s2192_s0 + $0x20] sm:$0xff]   ;;  %v1699_v7 = vld [vmem:[%s2192_s0 + $0x30] sm:$0xff]   ;;  %v1710_v9 = vld [vmem:[%s2192_s0 + $0x88] sm:$0xff]  }
   0x4   :  { %1686 = vmatpush3.bf16.msra.mxu1 %v1692_v0  ;;  %v1709_v8 = vld [vmem:[%s2192_s0 + $0x80] sm:$0xff]   ;;  %v1711_v10 = vld [vmem:[%s2192_s0 + $0x90] sm:$0xff]   ;;  %v1712_v11 = vld [vmem:[%s2192_s0 + $0x98] sm:$0xff]  }
   0x5   :  { %1653 = vmatprep.mubr.msk.bf16.mxu1 %vm249_vm0, %v1709_v8  ;;  %v1713_v12 = vld [vmem:[%s2192_s0 + $0xa0] sm:$0xff]   ;;  %v1700_v13 = vld [vmem:[%s2192_s0 + $0x38] sm:$0xff]   ;;  %v1714_v15 = vld [vmem:[%s2192_s0 + $0xa8] sm:$0xff]  }
   0x6   :  { %1622 = vmatmul.mubr.msk.bf16.vlgmr.msra.gmra.mrb[0].mxu0 %vm249_vm0, %v1694_v2  ;;  %v1701_v14 = vld [vmem:[%s2192_s0 + $0x40] sm:$0xff]   ;;  %v1715_v16 = vld [vmem:[%s2192_s0 + $0xb0] sm:$0xff]  }
   0x7   :  { %1625 = vmatprep.mubr.msk.bf16.mxu0 %vm249_vm0, %v1695_v3  ;;  %1654 = vmatmul.mubr.msk.bf16.vlgmr.msra.gmra.mrb[0].mxu1 %vm249_vm0, %v1710_v9 }
   0x8   :  { %1657 = vmatprep.mubr.msk.bf16.mxu1 %vm249_vm0, %v1711_v10 }
   0xe   :  { %1626 = vmatmul.mubr.msk.bf16.gmra.mrb[4].mxu0 %vm249_vm0, %v1696_v4 }
   0xf   :  { %1629 = vmatprep.mubr.msk.bf16.mxu0 %vm249_vm0, %v1697_v5  ;;  %1658 = vmatmul.mubr.msk.bf16.gmra.mrb[4].mxu1 %vm249_vm0, %v1712_v11 }
  0x10   :  { %1661 = vmatprep.mubr.msk.bf16.mxu1 %vm249_vm0, %v1713_v12 }
  0x16   :  { %1630 = vmatmul.mubr.msk.bf16.gmra.mrb[8].mxu0 %vm249_vm0, %v1698_v6 }
  0x17   :  { %1633 = vmatprep.mubr.msk.bf16.mxu0 %vm249_vm0, %v1699_v7 }
  0x1e   :  { %1634 = vmatmul.mubr.msk.bf16.gmra.mrb[12].mxu0 %vm249_vm0, %v1700_v13 }
  0x1f   :  { %1637 = vmatprep.mubr.msk.bf16.mxu0 %vm249_vm0, %v1701_v14 }
  0x20   :  { %11 = vsyncpa [#allocation5], 0  ;;  %v1702_v17 = vld [vmem:[%s2192_s0 + $0x48] sm:$0xff]   ;;  %v1703_v18 = vld [vmem:[%s2192_s0 + $0x50] sm:$0xff]   ;;  %1662 = vmatmul.mubr.msk.bf16.gmra.mrb[8].mxu1 %vm249_vm0, %v1714_v15 }
  0x21   :  { %1665 = vmatprep.mubr.msk.bf16.mxu1 %vm249_vm0, %v1715_v16  ;;  %v1716_v19 = vld [vmem:[%s2192_s0 + $0xb8] sm:$0xff]   ;;  %v1717_v20 = vld [vmem:[%s2192_s0 + $0xc0] sm:$0xff]   ;;  %v1718_v23 = vld [vmem:[%s2192_s0 + $0xc8] sm:$0xff]  }
  0x22   :  { %v1704_v21 = vld [vmem:[%s2192_s0 + $0x58] sm:$0xff]   ;;  %v1705_v22 = vld [vmem:[%s2192_s0 + $0x60] sm:$0xff]   ;;  %v1719_v24 = vld [vmem:[%s2192_s0 + $0xd0] sm:$0xff]  }
  0x23   :  { %v1706_v25 = vld [vmem:[%s2192_s0 + $0x68] sm:$0xff]   ;;  %v1707_v26 = vld [vmem:[%s2192_s0 + $0x70] sm:$0xff]   ;;  %v1720_v27 = vld [vmem:[%s2192_s0 + $0xd8] sm:$0xff]  }
  0x24   :  { %v1721_v28 = vld [vmem:[%s2192_s0 + $0xe0] sm:$0xff]   ;;  %v1708_v29 = vld [vmem:[%s2192_s0 + $0x78] sm:$0xff]   ;;  %v1722_v30 = vld [vmem:[%s2192_s0 + $0xe8] sm:$0xff]  }
  0x25   :  { %v1723_v31 = vld [vmem:[%s2192_s0 + $0xf0] sm:$0xff]   ;;  %v1724_v32 = vld [vmem:[%s2192_s0 + $0xf8] sm:$0xff]   ;;  %s1795_s0 = smov [#allocation2]  }
  0x26   :  { %1638 = vmatmul.mubr.msk.bf16.gmra.mrb[16].mxu0 %vm249_vm0, %v1702_v17  ;;  %s1164_s26 = sshll.u32 %s1795_s0, 4  ;;  %s1165_s26 = int_to_ptr.vmem [resolvable:$true] %s1164_s26 }
  0x27   :  { %1641 = vmatprep.mubr.msk.bf16.mxu0 %vm249_vm0, %v1703_v18  ;;  %s1725_s27 = scalar_lea.vmem %s1165_s26, 4096  ;;  %p1730_p1 = scmp.lt.s32.totalorder %s1165_s26, %s1165_s26 }
  0x28   :  { %1666 = vmatmul.mubr.msk.bf16.gmra.mrb[12].mxu1 %vm249_vm0, %v1716_v19  ;;  %p1726_p0 = scmp.ne.s32.totalorder %s1165_s26, %s1725_s27  ;;  %p1731_p2 = scmp.lt.s32.totalorder %s1725_s27, %s1725_s27 }
  0x29   :  { %1669 = vmatprep.mubr.msk.bf16.mxu1 %vm249_vm0, %v1717_v20 }
  0x2a   :  { %p1732_p3 = por %p1731_p2, %p1730_p1 }
  0x2c   :  { %p1733_p4 = pnand %p1732_p3, %p1726_p0 }
  0x2e   :  { %1642 = vmatmul.mubr.msk.bf16.gmra.mrb[20].mxu0 %vm249_vm0, %v1704_v21 }
  0x2f   :  { %1645 = vmatprep.mubr.msk.bf16.mxu0 %vm249_vm0, %v1705_v22 }
  0x30   :  { %1670 = vmatmul.mubr.msk.bf16.gmra.mrb[16].mxu1 %vm249_vm0, %v1718_v23 }
  0x31   :  { %1673 = vmatprep.mubr.msk.bf16.mxu1 %vm249_vm0, %v1719_v24 }
  0x36   :  { %1646 = vmatmul.mubr.msk.bf16.gmra.mrb[24].mxu0 %vm249_vm0, %v1706_v25 }
  0x37   :  { %1649 = vmatprep.mubr.msk.bf16.mxu0 %vm249_vm0, %v1707_v26 }
  0x38   :  { %1674 = vmatmul.mubr.msk.bf16.gmra.mrb[20].mxu1 %vm249_vm0, %v1720_v27 }
  0x39   :  { %1677 = vmatprep.mubr.msk.bf16.mxu1 %vm249_vm0, %v1721_v28 }
  0x3e   :  { %1650 = vmatmul.mubr.msk.bf16.gmra.mrb[28].mxu0 %vm249_vm0, %v1708_v29 }
  0x40   :  { %1678 = vmatmul.mubr.msk.bf16.gmra.mrb[24].mxu1 %vm249_vm0, %v1722_v30 }
  0x41   :  { %1681 = vmatprep.mubr.msk.bf16.mxu1 %vm249_vm0, %v1723_v31 }
  0x48   :  { %1682 = vmatmul.mubr.msk.bf16.gmra.mrb[28].mxu1 %vm249_vm0, %v1724_v32 }
  0xd9   :  { %v1623_v33 = vpop.f32.mrb[0].mxu0 }
  0xda   :  { %v380_v34 = vpop.f32.mrb[1].mxu0  ;;  %v1027_v42 = vmul.f32 %v1623_v33, %v1623_v33  ;;  %v1956_v63 = vpop.f32.mrb[0].mxu1 }
  0xdb   :  { %v1624_v35 = vpop.f32.mrb[2].mxu0  ;;  %v1025_v38 = vmul.f32 %v380_v34, %v380_v34  ;;  %v1958_v0 = vpop.f32.mrb[1].mxu1 }
  0xdc   :  { %v1403_v36 = vpack.c.bf16 %v1624_v35, %v1623_v33  ;;  %v383_v37 = vpop.f32.mrb[3].mxu0  ;;  %v1028_v45 = vmul.f32 %v1624_v35, %v1624_v35  ;;  %v1960_v5 = vpop.f32.mrb[2].mxu1 }
  0xdd   :  { %v1398_v39 = vpack.c.bf16 %v383_v37, %v380_v34  ;;  %v955_v40 = vadd.f32 %v383_v37, %v380_v34  ;;  %v1026_v41 = vmul.f32 %v383_v37, %v383_v37  ;;  %v1483_v7 = vpack.c.bf16 %v1960_v5, %v1956_v63  ;;  %v1964_v8 = vpop.f32.mrb[3].mxu1 }
  0xde   :  { %1555 = vst [vmem:[#allocation2 + $0x8] sm:$0xff] %v1403_v36   ;;  %v1478_v13 = vpack.c.bf16 %v1964_v8, %v1958_v0 }
  0xdf   :  { %1399 = vst [vmem:[#allocation2] sm:$0xff] %v1398_v39   ;;  %v956_v43 = vadd.f32 %v1623_v33, %v955_v40  ;;  %v1089_v44 = vadd.f32 %v1026_v41, %v1025_v38  ;;  %1571 = vst [vmem:[#allocation2 + $0x88] sm:$0xff] %v1483_v7  }
  0xe0   :  { %1570 = vst [vmem:[#allocation2 + $0x80] sm:$0xff] %v1478_v13  }
  0xe1   :  { %v1090_v46 = vadd.f32 %v1089_v44, %v1027_v42  ;;  %v1627_v47 = vpop.f32.mrb[4].mxu0  ;;  %v957_v48 = vadd.f32 %v1624_v35, %v956_v43 }
  0xe2   :  { %v396_v49 = vpop.f32.mrb[5].mxu0  ;;  %v1031_v60 = vmul.f32 %v1627_v47, %v1627_v47  ;;  %v1968_v23 = vpop.f32.mrb[4].mxu1 }
  0xe3   :  { %v958_v50 = vadd.f32 %v957_v48, %v396_v49  ;;  %v1029_v51 = vmul.f32 %v396_v49, %v396_v49  ;;  %v1091_v52 = vadd.f32 %v1090_v46, %v1028_v45  ;;  %v1628_v53 = vpop.f32.mrb[6].mxu0  ;;  %v1970_v24 = vpop.f32.mrb[5].mxu1 }
  0xe4   :  { %v1413_v54 = vpack.c.bf16 %v1628_v53, %v1627_v47  ;;  %v399_v55 = vpop.f32.mrb[7].mxu0  ;;  %v1032_v1 = vmul.f32 %v1628_v53, %v1628_v53  ;;  %v1972_v29 = vpop.f32.mrb[6].mxu1 }
  0xe5   :  { %v1092_v56 = vadd.f32 %v1091_v52, %v1029_v51  ;;  %v1408_v57 = vpack.c.bf16 %v399_v55, %v396_v49  ;;  %v959_v58 = vadd.f32 %v958_v50, %v399_v55  ;;  %v1030_v59 = vmul.f32 %v399_v55, %v399_v55  ;;  %v1976_v32 = vpop.f32.mrb[7].mxu1 }
  0xe6   :  { %1557 = vst [vmem:[#allocation2 + $0x18] sm:$0xff] %v1413_v54   ;;  %v1493_v31 = vpack.c.bf16 %v1972_v29, %v1968_v23  ;;  %v1488_v37 = vpack.c.bf16 %v1976_v32, %v1970_v24 }
  0xe7   :  { %1556 = vst [vmem:[#allocation2 + $0x10] sm:$0xff] %v1408_v57   ;;  %v960_v61 = vadd.f32 %v1627_v47, %v959_v58  ;;  %v1093_v62 = vadd.f32 %v1092_v56, %v1030_v59 }
  0xe8   :  { %1573 = vst [vmem:[#allocation2 + $0x98] sm:$0xff] %v1493_v31   ;;  %1572 = vst [vmem:[#allocation2 + $0x90] sm:$0xff] %v1488_v37  }
  0xe9   :  { %v1094_v2 = vadd.f32 %v1093_v62, %v1031_v60  ;;  %v1631_v3 = vpop.f32.mrb[8].mxu0  ;;  %v961_v4 = vadd.f32 %v1628_v53, %v960_v61 }
  0xea   :  { %v412_v6 = vpop.f32.mrb[9].mxu0  ;;  %v1035_v20 = vmul.f32 %v1631_v3, %v1631_v3 }
  0xeb   :  { %v962_v9 = vadd.f32 %v961_v4, %v412_v6  ;;  %v1033_v10 = vmul.f32 %v412_v6, %v412_v6  ;;  %v1095_v11 = vadd.f32 %v1094_v2, %v1032_v1  ;;  %v1632_v12 = vpop.f32.mrb[10].mxu0 }
  0xec   :  { %v1423_v14 = vpack.c.bf16 %v1632_v12, %v1631_v3  ;;  %v415_v15 = vpop.f32.mrb[11].mxu0  ;;  %v1036_v25 = vmul.f32 %v1632_v12, %v1632_v12 }
  0xed   :  { %v1096_v16 = vadd.f32 %v1095_v11, %v1033_v10  ;;  %v1418_v17 = vpack.c.bf16 %v415_v15, %v412_v6  ;;  %v963_v18 = vadd.f32 %v962_v9, %v415_v15  ;;  %v1034_v19 = vmul.f32 %v415_v15, %v415_v15 }
  0xee   :  { %1559 = vst [vmem:[#allocation2 + $0x28] sm:$0xff] %v1423_v14  }
  0xef   :  { %1558 = vst [vmem:[#allocation2 + $0x20] sm:$0xff] %v1418_v17   ;;  %v964_v21 = vadd.f32 %v1631_v3, %v963_v18  ;;  %v1097_v22 = vadd.f32 %v1096_v16, %v1034_v19 }
  0xf1   :  { %v1098_v26 = vadd.f32 %v1097_v22, %v1035_v20  ;;  %v1635_v27 = vpop.f32.mrb[12].mxu0  ;;  %v965_v28 = vadd.f32 %v1632_v12, %v964_v21 }
  0xf2   :  { %v428_v30 = vpop.f32.mrb[13].mxu0  ;;  %v1039_v44 = vmul.f32 %v1635_v27, %v1635_v27 }
  0xf3   :  { %v966_v33 = vadd.f32 %v965_v28, %v428_v30  ;;  %v1037_v34 = vmul.f32 %v428_v30, %v428_v30  ;;  %v1099_v35 = vadd.f32 %v1098_v26, %v1036_v25  ;;  %v1636_v36 = vpop.f32.mrb[14].mxu0  ;;  %v1980_v47 = vpop.f32.mrb[8].mxu1 }
  0xf4   :  { %v1433_v38 = vpack.c.bf16 %v1636_v36, %v1635_v27  ;;  %v431_v39 = vpop.f32.mrb[15].mxu0  ;;  %v1982_v48 = vpop.f32.mrb[9].mxu1  ;;  %v1040_v49 = vmul.f32 %v1636_v36, %v1636_v36 }
  0xf5   :  { %v1100_v40 = vadd.f32 %v1099_v35, %v1037_v34  ;;  %v1428_v41 = vpack.c.bf16 %v431_v39, %v428_v30  ;;  %v967_v42 = vadd.f32 %v966_v33, %v431_v39  ;;  %v1038_v43 = vmul.f32 %v431_v39, %v431_v39  ;;  %v1984_v53 = vpop.f32.mrb[10].mxu1 }
  0xf6   :  { %1561 = vst [vmem:[#allocation2 + $0x38] sm:$0xff] %v1433_v38   ;;  %v1503_v55 = vpack.c.bf16 %v1984_v53, %v1980_v47  ;;  %v1988_v56 = vpop.f32.mrb[11].mxu1 }
  0xf7   :  { %1560 = vst [vmem:[#allocation2 + $0x30] sm:$0xff] %v1428_v41   ;;  %v968_v45 = vadd.f32 %v1635_v27, %v967_v42  ;;  %v1101_v46 = vadd.f32 %v1100_v40, %v1038_v43  ;;  %v1498_v61 = vpack.c.bf16 %v1988_v56, %v1982_v48 }
  0xf8   :  { %1575 = vst [vmem:[#allocation2 + $0xa8] sm:$0xff] %v1503_v55  }
  0xf9   :  { %v1102_v50 = vadd.f32 %v1101_v46, %v1039_v44  ;;  %v1639_v51 = vpop.f32.mrb[16].mxu0  ;;  %v969_v52 = vadd.f32 %v1636_v36, %v968_v45  ;;  %1574 = vst [vmem:[#allocation2 + $0xa0] sm:$0xff] %v1498_v61  }
  0xfa   :  { %v444_v54 = vpop.f32.mrb[17].mxu0  ;;  %v1043_v7 = vmul.f32 %v1639_v51, %v1639_v51 }
  0xfb   :  { %v970_v57 = vadd.f32 %v969_v52, %v444_v54  ;;  %v1041_v58 = vmul.f32 %v444_v54, %v444_v54  ;;  %v1103_v59 = vadd.f32 %v1102_v50, %v1040_v49  ;;  %v1640_v60 = vpop.f32.mrb[18].mxu0  ;;  %v1992_v11 = vpop.f32.mrb[12].mxu1 }
  0xfc   :  { %v1443_v62 = vpack.c.bf16 %v1640_v60, %v1639_v51  ;;  %v447_v1 = vpop.f32.mrb[19].mxu0  ;;  %v1994_v12 = vpop.f32.mrb[13].mxu1  ;;  %v1044_v13 = vmul.f32 %v1640_v60, %v1640_v60 }
  0xfd   :  { %v1104_v2 = vadd.f32 %v1103_v59, %v1041_v58  ;;  %v1438_v3 = vpack.c.bf16 %v447_v1, %v444_v54  ;;  %v971_v4 = vadd.f32 %v970_v57, %v447_v1  ;;  %v1042_v6 = vmul.f32 %v447_v1, %v447_v1  ;;  %v1996_v17 = vpop.f32.mrb[14].mxu1 }
  0xfe   :  { %1563 = vst [vmem:[#allocation2 + $0x48] sm:$0xff] %v1443_v62   ;;  %v1513_v19 = vpack.c.bf16 %v1996_v17, %v1992_v11  ;;  %v2000_v20 = vpop.f32.mrb[15].mxu1 }
  0xff   :  { %1562 = vst [vmem:[#allocation2 + $0x40] sm:$0xff] %v1438_v3   ;;  %v972_v9 = vadd.f32 %v1639_v51, %v971_v4  ;;  %v1105_v10 = vadd.f32 %v1104_v2, %v1042_v6  ;;  %v1508_v27 = vpack.c.bf16 %v2000_v20, %v1994_v12 }
 0x100   :  { %1577 = vst [vmem:[#allocation2 + $0xb8] sm:$0xff] %v1513_v19  }
 0x101   :  { %v1106_v14 = vadd.f32 %v1105_v10, %v1043_v7  ;;  %v1643_v15 = vpop.f32.mrb[20].mxu0  ;;  %v973_v16 = vadd.f32 %v1640_v60, %v972_v9  ;;  %1576 = vst [vmem:[#allocation2 + $0xb0] sm:$0xff] %v1508_v27  }
 0x102   :  { %v460_v18 = vpop.f32.mrb[21].mxu0  ;;  %v1047_v36 = vmul.f32 %v1643_v15, %v1643_v15 }
 0x103   :  { %v974_v21 = vadd.f32 %v973_v16, %v460_v18  ;;  %v1045_v22 = vmul.f32 %v460_v18, %v460_v18  ;;  %v1107_v25 = vadd.f32 %v1106_v14, %v1044_v13  ;;  %v1644_v26 = vpop.f32.mrb[22].mxu0  ;;  %v2004_v39 = vpop.f32.mrb[16].mxu1 }
 0x104   :  { %v1453_v28 = vpack.c.bf16 %v1644_v26, %v1643_v15  ;;  %v463_v30 = vpop.f32.mrb[23].mxu0  ;;  %v2006_v40 = vpop.f32.mrb[17].mxu1  ;;  %v1048_v41 = vmul.f32 %v1644_v26, %v1644_v26 }
 0x105   :  { %v1108_v31 = vadd.f32 %v1107_v25, %v1045_v22  ;;  %v1448_v33 = vpack.c.bf16 %v463_v30, %v460_v18  ;;  %v975_v34 = vadd.f32 %v974_v21, %v463_v30  ;;  %v1046_v35 = vmul.f32 %v463_v30, %v463_v30  ;;  %v2008_v45 = vpop.f32.mrb[18].mxu1 }
 0x106   :  { %1565 = vst [vmem:[#allocation2 + $0x58] sm:$0xff] %v1453_v28   ;;  %v1523_v49 = vpack.c.bf16 %v2008_v45, %v2004_v39  ;;  %v2012_v50 = vpop.f32.mrb[19].mxu1 }
 0x107   :  { %1564 = vst [vmem:[#allocation2 + $0x50] sm:$0xff] %v1448_v33   ;;  %v976_v37 = vadd.f32 %v1643_v15, %v975_v34  ;;  %v1109_v38 = vadd.f32 %v1108_v31, %v1046_v35  ;;  %v1518_v57 = vpack.c.bf16 %v2012_v50, %v2006_v40 }
 0x108   :  { %1579 = vst [vmem:[#allocation2 + $0xc8] sm:$0xff] %v1523_v49   ;;  %v1057_v49 = vmul.f32 %v1958_v0, %v1958_v0 }
 0x109   :  { %v1110_v42 = vadd.f32 %v1109_v38, %v1047_v36  ;;  %v1647_v43 = vpop.f32.mrb[24].mxu0  ;;  %v977_v44 = vadd.f32 %v1644_v26, %v976_v37  ;;  %1578 = vst [vmem:[#allocation2 + $0xc0] sm:$0xff] %v1518_v57  }
 0x10a   :  { %v476_v46 = vpop.f32.mrb[25].mxu0  ;;  %v1051_v2 = vmul.f32 %v1647_v43, %v1647_v43 }
 0x10b   :  { %v978_v51 = vadd.f32 %v977_v44, %v476_v46  ;;  %v1049_v52 = vmul.f32 %v476_v46, %v476_v46  ;;  %v1111_v54 = vadd.f32 %v1110_v42, %v1048_v41  ;;  %v1648_v55 = vpop.f32.mrb[26].mxu0  ;;  %v2016_v6 = vpop.f32.mrb[20].mxu1 }
 0x10c   :  { %v1463_v58 = vpack.c.bf16 %v1648_v55, %v1647_v43  ;;  %v479_v59 = vpop.f32.mrb[27].mxu0  ;;  %v2018_v7 = vpop.f32.mrb[21].mxu1  ;;  %v1052_v9 = vmul.f32 %v1648_v55, %v1648_v55 }
 0x10d   :  { %v1112_v60 = vadd.f32 %v1111_v54, %v1049_v52  ;;  %v1458_v61 = vpack.c.bf16 %v479_v59, %v476_v46  ;;  %v979_v62 = vadd.f32 %v978_v51, %v479_v59  ;;  %v1050_v1 = vmul.f32 %v479_v59, %v479_v59  ;;  %v2020_v15 = vpop.f32.mrb[22].mxu1 }
 0x10e   :  { %1567 = vst [vmem:[#allocation2 + $0x68] sm:$0xff] %v1463_v58   ;;  %v1533_v18 = vpack.c.bf16 %v2020_v15, %v2016_v6  ;;  %v2024_v19 = vpop.f32.mrb[23].mxu1 }
 0x10f   :  { %1566 = vst [vmem:[#allocation2 + $0x60] sm:$0xff] %v1458_v61   ;;  %v980_v3 = vadd.f32 %v1647_v43, %v979_v62  ;;  %v1113_v4 = vadd.f32 %v1112_v60, %v1050_v1  ;;  %v1528_v27 = vpack.c.bf16 %v2024_v19, %v2018_v7  ;;  %v1058_v61 = vmul.f32 %v1964_v8, %v1964_v8 }
 0x110   :  { %1581 = vst [vmem:[#allocation2 + $0xd8] sm:$0xff] %v1533_v18   ;;  %v1059_v62 = vmul.f32 %v1956_v63, %v1956_v63 }
 0x111   :  { %v1114_v10 = vadd.f32 %v1113_v4, %v1051_v2  ;;  %v1651_v13 = vpop.f32.mrb[28].mxu0  ;;  %v981_v14 = vadd.f32 %v1648_v55, %v980_v3  ;;  %1580 = vst [vmem:[#allocation2 + $0xd0] sm:$0xff] %v1528_v27   ;;  %v1060_v4 = vmul.f32 %v1960_v5, %v1960_v5 }
 0x112   :  { %v492_v16 = vpop.f32.mrb[29].mxu0  ;;  %v1055_v36 = vmul.f32 %v1651_v13, %v1651_v13 }
 0x113   :  { %v982_v21 = vadd.f32 %v981_v14, %v492_v16  ;;  %v1053_v22 = vmul.f32 %v492_v16, %v492_v16  ;;  %v1115_v25 = vadd.f32 %v1114_v10, %v1052_v9  ;;  %v1652_v26 = vpop.f32.mrb[30].mxu0  ;;  %v2028_v41 = vpop.f32.mrb[24].mxu1 }
 0x114   :  { %v1473_v28 = vpack.c.bf16 %v1652_v26, %v1651_v13  ;;  %v495_v30 = vpop.f32.mrb[31].mxu0  ;;  %v2030_v42 = vpop.f32.mrb[25].mxu1  ;;  %v1056_v43 = vmul.f32 %v1652_v26, %v1652_v26 }
 0x115   :  { %v1116_v31 = vadd.f32 %v1115_v25, %v1053_v22  ;;  %v1468_v33 = vpack.c.bf16 %v495_v30, %v492_v16  ;;  %v983_v34 = vadd.f32 %v982_v21, %v495_v30  ;;  %v1054_v35 = vmul.f32 %v495_v30, %v495_v30  ;;  %v2034_v51 = vpop.f32.mrb[26].mxu1 }
 0x116   :  { %1569 = vst [vmem:[#allocation2 + $0x78] sm:$0xff] %v1473_v28   ;;  %v1543_v52 = vpack.c.bf16 %v2034_v51, %v2028_v41  ;;  %v2038_v54 = vpop.f32.mrb[27].mxu1  ;;  %v1062_v25 = vmul.f32 %v1976_v32, %v1976_v32 }
 0x117   :  { %1568 = vst [vmem:[#allocation2 + $0x70] sm:$0xff] %v1468_v33   ;;  %v984_v37 = vadd.f32 %v1651_v13, %v983_v34  ;;  %v1117_v38 = vadd.f32 %v1116_v31, %v1054_v35  ;;  %v1538_v58 = vpack.c.bf16 %v2038_v54, %v2030_v42 }
 0x118   :  { %1583 = vst [vmem:[#allocation2 + $0xe8] sm:$0xff] %v1543_v52  }
 0x119   :  { %v1118_v44 = vadd.f32 %v1117_v38, %v1055_v36  ;;  %v985_v46 = vadd.f32 %v1652_v26, %v984_v37  ;;  %1582 = vst [vmem:[#allocation2 + $0xe0] sm:$0xff] %v1538_v58  }
 0x11b   :  { %v986_v55 = vadd.f32 %v985_v46, %v1958_v0  ;;  %v1119_v57 = vadd.f32 %v1118_v44, %v1056_v43  ;;  %v2049_v3 = vpop.f32.mrb[28].mxu1 }
 0x11c   :  { %v2051_v0 = vpop.f32.mrb[29].mxu1 }
 0x11d   :  { %v1120_v59 = vadd.f32 %v1119_v57, %v1057_v49  ;;  %v987_v60 = vadd.f32 %v986_v55, %v1964_v8  ;;  %v1061_v8 = vmul.f32 %v1970_v24, %v1970_v24  ;;  %v2058_v13 = vpop.f32.mrb[30].mxu1 }
 0x11e   :  { %v2062_v14 = vpop.f32.mrb[31].mxu1 }
 0x11f   :  { %v988_v1 = vadd.f32 %v1956_v63, %v987_v60  ;;  %v1121_v2 = vadd.f32 %v1120_v59, %v1058_v61  ;;  %v1553_v63 = vpack.c.bf16 %v2058_v13, %v2049_v3  ;;  %v1548_v21 = vpack.c.bf16 %v2062_v14, %v2051_v0 }
 0x121   :  { %v1122_v9 = vadd.f32 %v1121_v2, %v1059_v62  ;;  %v989_v10 = vadd.f32 %v1960_v5, %v988_v1  ;;  %1585 = vst [vmem:[#allocation2 + $0xf8] sm:$0xff] %v1553_v63   ;;  %1584 = vst [vmem:[#allocation2 + $0xf0] sm:$0xff] %v1548_v21  }
 0x123   :  { %v990_v16 = vadd.f32 %v989_v10, %v1970_v24  ;;  %v1123_v18 = vadd.f32 %v1122_v9, %v1060_v4 }
 0x125   :  { %v1124_v22 = vadd.f32 %v1123_v18, %v1061_v8  ;;  %v991_v5 = vadd.f32 %v990_v16, %v1976_v32 }
 0x126   :  { %1736 = shalt.err (!%p1733_p4)
}
 0x127   :  { %s1737_s30 = scalar_lea.hbm %s2194_s2, 4096 }
 0x128   :  { %p1738_p5 = scmp.ne.s32.totalorder %s2194_s2, %s1737_s30  ;;  %p1741_p6 = scmp.lt.u32.totalorder %s1737_s30, %s2194_s2 }
 0x12a   :  { %p1743_p7 = pnand %p1741_p6, %p1738_p5 }
 0x12c   :  { %1746 = shalt.err (!%p1743_p7)
}
 0x12d   :  { %s1796_s9 = smov 64   ;;  %s1797_s10 = smov 4   ;;  %v1063_v24 = vmul.f32 %v1968_v23, %v1968_v23  ;;  %v992_v32 = vadd.f32 %v1968_v23, %v991_v5  ;;  %v1125_v26 = vadd.f32 %v1124_v22, %v1062_v25  ;;  %v1064_v27 = vmul.f32 %v1972_v29, %v1972_v29 }
 0x12e   :  { %1170 = dma.vmem_to_hbm [thread:$0]  %s1165_s26, 4096, %s2194_s2, [#allocation3], %s1796_s9, %s1796_s9, %s1797_s10   ;;  %v1065_v31 = vmul.f32 %v1982_v48, %v1982_v48  ;;  %v1066_v37 = vmul.f32 %v1988_v56, %v1988_v56  ;;  %v1067_v23 = vmul.f32 %v1980_v47, %v1980_v47  ;;  %v1070_v57 = vmul.f32 %v2000_v20, %v2000_v20 }
 0x12f   :  { %v1126_v28 = vadd.f32 %v1125_v26, %v1063_v24  ;;  %v993_v30 = vadd.f32 %v1972_v29, %v992_v32  ;;  %v1068_v29 = vmul.f32 %v1984_v53, %v1984_v53  ;;  %v1074_v4 = vmul.f32 %v2012_v50, %v2012_v50  ;;  %s1798_s2 = smov [#allocation4]   ;;  %s1799_s14 = smov [#allocation6]  }
 0x130   :  { %v1078_v22 = vmul.f32 %v2024_v19, %v2024_v19  ;;  %s1177_s13 = sshll.u32 %s1798_s2, 4  ;;  %s1187_s15 = sshll.u32 %s1799_s14, 4  ;;  %s1178_s13 = int_to_ptr.vmem [resolvable:$true] %s1177_s13  ;;  %s2160_s15 = int_to_ptr.vmem [resolvable:$true] %s1187_s15 }
 0x131   :  { %v994_v33 = vadd.f32 %v993_v30, %v1982_v48  ;;  %v1127_v34 = vadd.f32 %v1126_v28, %v1064_v27  ;;  %v1069_v48 = vmul.f32 %v1994_v12, %v1994_v12  ;;  %v1082_v30 = vmul.f32 %v2038_v54, %v2038_v54  ;;  %s1747_s16 = scalar_lea.vmem %s1178_s13, 16  ;;  %s1751_s17 = scalar_lea.vmem %s1178_s13, 32 }
 0x132   :  { %p1748_p8 = scmp.ne.s32.totalorder %s1178_s13, %s1747_s16  ;;  %p1752_p9 = scmp.lt.s32.totalorder %s1178_s13, %s1178_s13 }
 0x133   :  { %v1128_v35 = vadd.f32 %v1127_v34, %v1065_v31  ;;  %v995_v36 = vadd.f32 %v994_v33, %v1988_v56  ;;  %p1753_p10 = scmp.lt.s32.totalorder %s1751_s17, %s1747_s16 }
 0x135   :  { %v996_v38 = vadd.f32 %v1980_v47, %v995_v36  ;;  %v1129_v43 = vadd.f32 %v1128_v35, %v1066_v37  ;;  %v1071_v47 = vmul.f32 %v1992_v11, %v1992_v11  ;;  %p1754_p11 = por %p1753_p10, %p1752_p9 }
 0x137   :  { %v1130_v44 = vadd.f32 %v1129_v43, %v1067_v23  ;;  %v997_v46 = vadd.f32 %v1984_v53, %v996_v38  ;;  %v1072_v53 = vmul.f32 %v1996_v17, %v1996_v17  ;;  %v1086_v38 = vmul.f32 %v2062_v14, %v2062_v14  ;;  %p1755_p12 = pnand %p1754_p11, %p1748_p8 }
 0x139   :  { %v998_v49 = vadd.f32 %v997_v46, %v1994_v12  ;;  %v1131_v52 = vadd.f32 %v1130_v44, %v1068_v29  ;;  %v1073_v12 = vmul.f32 %v2006_v40, %v2006_v40 }
 0x13b   :  { %v1132_v55 = vadd.f32 %v1131_v52, %v1069_v48  ;;  %v999_v56 = vadd.f32 %v998_v49, %v2000_v20 }
 0x13d   :  { %v1000_v58 = vadd.f32 %v1992_v11, %v999_v56  ;;  %v1133_v59 = vadd.f32 %v1132_v55, %v1070_v57  ;;  %v1075_v11 = vmul.f32 %v2004_v39, %v2004_v39 }
 0x13f   :  { %v1134_v60 = vadd.f32 %v1133_v59, %v1071_v47  ;;  %v1001_v61 = vadd.f32 %v1996_v17, %v1000_v58  ;;  %v1076_v17 = vmul.f32 %v2008_v45, %v2008_v45 }
 0x141   :  { %v1002_v62 = vadd.f32 %v1001_v61, %v2006_v40  ;;  %v1135_v1 = vadd.f32 %v1134_v60, %v1072_v53  ;;  %v1077_v40 = vmul.f32 %v2018_v7, %v2018_v7 }
 0x143   :  { %v1136_v2 = vadd.f32 %v1135_v1, %v1073_v12  ;;  %v1003_v20 = vadd.f32 %v1002_v62, %v2012_v50 }
 0x145   :  { %v1004_v9 = vadd.f32 %v2004_v39, %v1003_v20  ;;  %v1137_v10 = vadd.f32 %v1136_v2, %v1074_v4  ;;  %v1079_v39 = vmul.f32 %v2016_v6, %v2016_v6 }
 0x147   :  { %v1138_v8 = vadd.f32 %v1137_v10, %v1075_v11  ;;  %v1005_v63 = vadd.f32 %v2008_v45, %v1004_v9  ;;  %v1080_v45 = vmul.f32 %v2020_v15, %v2020_v15 }
 0x149   :  { %v1006_v16 = vadd.f32 %v1005_v63, %v2018_v7  ;;  %v1139_v18 = vadd.f32 %v1138_v8, %v1076_v17  ;;  %v1081_v7 = vmul.f32 %v2030_v42, %v2030_v42 }
 0x14b   :  { %v1140_v21 = vadd.f32 %v1139_v18, %v1077_v40  ;;  %v1007_v50 = vadd.f32 %v1006_v16, %v2024_v19 }
 0x14d   :  { %v1008_v5 = vadd.f32 %v2016_v6, %v1007_v50  ;;  %v1141_v25 = vadd.f32 %v1140_v21, %v1078_v22  ;;  %v1083_v6 = vmul.f32 %v2028_v41, %v2028_v41 }
 0x14f   :  { %v1142_v24 = vadd.f32 %v1141_v25, %v1079_v39  ;;  %v1009_v32 = vadd.f32 %v2020_v15, %v1008_v5  ;;  %v1084_v15 = vmul.f32 %v2034_v51, %v2034_v51 }
 0x151   :  { %v1010_v26 = vadd.f32 %v1009_v32, %v2030_v42  ;;  %v1143_v27 = vadd.f32 %v1142_v24, %v1080_v45  ;;  %v1085_v42 = vmul.f32 %v2051_v0, %v2051_v0 }
 0x153   :  { %v1144_v28 = vadd.f32 %v1143_v27, %v1081_v7  ;;  %v1011_v19 = vadd.f32 %v1010_v26, %v2038_v54 }
 0x155   :  { %v1012_v31 = vadd.f32 %v2028_v41, %v1011_v19  ;;  %v1145_v33 = vadd.f32 %v1144_v28, %v1082_v30  ;;  %v1087_v41 = vmul.f32 %v2049_v3, %v2049_v3 }
 0x157   :  { %v1146_v34 = vadd.f32 %v1145_v33, %v1083_v6  ;;  %v1013_v35 = vadd.f32 %v2034_v51, %v1012_v31  ;;  %v1088_v51 = vmul.f32 %v2058_v13, %v2058_v13 }
 0x159   :  { %v1014_v36 = vadd.f32 %v1013_v35, %v2051_v0  ;;  %v1147_v37 = vadd.f32 %v1146_v34, %v1084_v15 }
 0x15b   :  { %v1148_v23 = vadd.f32 %v1147_v37, %v1085_v42  ;;  %v1015_v54 = vadd.f32 %v1014_v36, %v2062_v14 }
 0x15d   :  { %v1016_v43 = vadd.f32 %v2049_v3, %v1015_v54  ;;  %v1149_v29 = vadd.f32 %v1148_v23, %v1086_v38 }
 0x15f   :  { %v1017_v44 = vadd.f32 %v2058_v13, %v1016_v43  ;;  %v1150_v46 = vadd.f32 %v1149_v29, %v1087_v41 }
 0x161   :  { %v1018_v0 = vrot.slane %v1017_v44, 4  ;;  %v1151_v48 = vadd.f32 %v1150_v46, %v1088_v51 }
 0x163   :  { %v1019_v49 = vadd.f32 %v1018_v0, %v1017_v44  ;;  %v1152_v52 = vrot.slane %v1151_v48, 4 }
 0x165   :  { %v1020_v55 = vrot.slane %v1019_v49, 2  ;;  %v1153_v56 = vadd.f32 %v1152_v52, %v1151_v48 }
 0x167   :  { %v1021_v57 = vadd.f32 %v1020_v55, %v1019_v49  ;;  %v1154_v14 = vrot.slane %v1153_v56, 2 }
 0x169   :  { %v1022_v47 = vrot.slane %v1021_v57, 1  ;;  %v1155_v58 = vadd.f32 %v1154_v14, %v1153_v56 }
 0x16b   :  { %v1023_v3 = vadd.f32 %v1022_v47, %v1021_v57  ;;  %v1156_v59 = vrot.slane %v1155_v58, 1 }
 0x16d   :  { %1024 = vst [vmem:[#allocation4] sm:$0x1] %v1023_v3  ;;  %v1157_v13 = vadd.f32 %v1156_v59, %v1155_v58 }
 0x16e   :  { %1758 = shalt.err (!%p1755_p12)
}
 0x16f   :  { %s1759_s20 = scalar_lea.hbm %s2195_s3, 16 }
 0x170   :  { %p1760_p13 = scmp.ne.s32.totalorder %s2195_s3, %s1759_s20  ;;  %p1763_p0 = scmp.lt.u32.totalorder %s1759_s20, %s2195_s3 }
 0x172   :  { %p1765_p1 = pnand %p1763_p0, %p1760_p13 }
 0x174   :  { %1768 = shalt.err (!%p1765_p1)
}
 0x175   :  { %1180 = dma.vmem_to_hbm [thread:$0]  %s1178_s13, 16, %s2195_s3, [#allocation5]   ;;  %1158 = vst [vmem:[#allocation6] sm:$0x1] %v1157_v13 }
 0x176   :  { %s1769_s0 = scalar_lea.vmem %s2160_s15, 16  ;;  %s1773_s26 = scalar_lea.vmem %s2160_s15, 32 }
 0x177   :  { %p1770_p2 = scmp.ne.s32.totalorder %s2160_s15, %s1769_s0  ;;  %p1774_p3 = scmp.lt.s32.totalorder %s2160_s15, %s2160_s15 }
 0x178   :  { %p1775_p4 = scmp.lt.s32.totalorder %s1773_s26, %s1769_s0 }
 0x17a   :  { %p1776_p5 = por %p1775_p4, %p1774_p3 }
 0x17c   :  { %p1777_p6 = pnand %p1776_p5, %p1770_p2 }
 0x17e   :  { %1780 = shalt.err (!%p1777_p6)
}
 0x17f   :  { %s1781_s29 = scalar_lea.hbm %s2196_s4, 16 }
 0x180   :  { %p1782_p7 = scmp.ne.s32.totalorder %s2196_s4, %s1781_s29  ;;  %p1785_p8 = scmp.lt.u32.totalorder %s1781_s29, %s2196_s4 }
 0x182   :  { %p1787_p9 = pnand %p1785_p8, %p1782_p7 }
 0x184   :  { %1790 = shalt.err (!%p1787_p9)
}
 0x185   :  { %1190 = dma.vmem_to_hbm [thread:$0]  %s2160_s15, 16, %s2196_s4, [#allocation5]  }
 0x186   :  { %1791 = dma.done.wait [#allocation3], 4096  }
 0x187   :  { %1792 = vsyncadd [#allocation3], 4294963200 }
 0x188   :  { %1793 = dma.done.wait [#allocation5], 32  }
 0x189   :  { %1794 = vsyncadd [#allocation5], 4294967264 }
 0x18a   :  { %1200 = vsyncpa [#allocation3], 1 }
 0x18b   :  { %1201 = vsyncpa [#allocation5], 1 }

</bundles_post_ra>
